<compile_context>
chip_gen: v7x
topology: tpu7x:2x2x1
jax: 0.10.0
libtpu: 0.0.40
codegen_flags: <defaults>
</compile_context>

<pallas_src>
import jax
import jax.numpy as jnp
from jax import lax
from jax.experimental import pallas as pl
from jax.experimental.pallas import tpu as pltpu

_BN_EPS = 1e-5
_LANE = 128


def _fused_kernel(x65_ref, x59_ref, w1_ref, w2_ref,
                  gamma_ref, beta_ref, mean_ref, var_ref, out_ref):
    # conv2d21 (1x1, no bias): bf16 MXU matmul, f32 accumulation.
    y = jnp.dot(w1_ref[...], x65_ref[...],
                preferred_element_type=jnp.float32)            # (Cout, Mp) f32

    # BatchNorm (inference form) as per-output-channel scale/shift, computed in-kernel
    # (rsqrt goes to the EUP slot; the fold costs one VPU mul hidden under MXU/DMA slack).
    scale = gamma_ref[...] * lax.rsqrt(var_ref[...] + _BN_EPS)  # (Cout, 1)
    shift = beta_ref[...] - mean_ref[...] * scale                # (Cout, 1)

    # BN scale/shift + residual add + ReLU in one fused VPU pass (all f32).
    y = jnp.maximum(y * scale + shift + x59_ref[...], 0.0)

    # conv2d22 (1x1, no bias): bf16 MXU matmul, f32 accumulation.
    out_ref[...] = jnp.dot(w2_ref[...], y.astype(jnp.bfloat16),
                           preferred_element_type=jnp.float32)


def fused_block(x65_cm, x59_cm, w1, w2, gamma, beta, mean, var):
    Cin, Mp = x65_cm.shape
    Cout = w1.shape[0]
    vmem = pl.BlockSpec(memory_space=pltpu.MemorySpace.VMEM)    # full array, VMEM-resident

    flops = 2 * Mp * Cin * Cout + 2 * Mp * Cout * Cout          # two 1x1-conv matmuls
    bytes_accessed = (x65_cm.size * x65_cm.dtype.itemsize
                      + x59_cm.size * x59_cm.dtype.itemsize
                      + w1.size * w1.dtype.itemsize
                      + w2.size * w2.dtype.itemsize
                      + 4 * Cout * 4                            # BN param vectors
                      + Cout * Mp * 4)                          # f32 output

    return pl.pallas_call(
        _fused_kernel,
        out_shape=jax.ShapeDtypeStruct((Cout, Mp), jnp.float32),
        in_specs=[vmem] * 8,
        out_specs=vmem,
        cost_estimate=pl.CostEstimate(
            flops=flops, transcendentals=Cout, bytes_accessed=bytes_accessed),
    )(x65_cm, x59_cm, w1, w2, gamma, beta, mean, var)


def module_forward(x65_nchw, x59_nchw, params):
    """x65, x59: (N, C, H, W) float32 — mirrors PyTorch M.forward(x65, x59)."""
    N, C, H, W = x65_nchw.shape
    M = N * H * W
    Mp = pl.cdiv(M, _LANE) * _LANE  # lane-dense (multiple of 128) spatial dim

    # Channel-major view: for N == 1 this is a pure reshape of NCHW.
    if N == 1:
        x65_cm = x65_nchw.reshape(C, M)
        x59_cm = x59_nchw.reshape(C, M)
    else:
        # TODO(synk): N > 1 needs one real transpose to get channel-major; module spec has N=1.
        x65_cm = jnp.transpose(x65_nchw.reshape(N, C, H * W), (1, 0, 2)).reshape(C, M)
        x59_cm = jnp.transpose(x59_nchw.reshape(N, C, H * W), (1, 0, 2)).reshape(C, M)

    # bf16 on the first-matmul activation; residual stays f32 for exact add/ReLU.
    x65_cm = x65_cm.astype(jnp.bfloat16)
    if Mp != M:
        x65_cm = jnp.pad(x65_cm, ((0, 0), (0, Mp - M)))
        x59_cm = jnp.pad(x59_cm, ((0, 0), (0, Mp - M)))

    # Weight views / bf16 casts (one-time / constant-foldable for static model weights).
    w1 = params["conv1_w"][:, :, 0, 0].astype(jnp.bfloat16)
    w2 = params["conv2_w"][:, :, 0, 0].astype(jnp.bfloat16)
    gamma = params["bn_gamma"].reshape(C, 1)
    beta = params["bn_beta"].reshape(C, 1)
    mean = params["bn_mean"].reshape(C, 1)
    var = params["bn_var"].reshape(C, 1)

    out_cm = fused_block(x65_cm, x59_cm, w1, w2, gamma, beta, mean, var)
    out_cm = out_cm[:, :M]  # drop lane padding

    if N == 1:
        return out_cm.reshape(1, C, H, W)
    return jnp.transpose(out_cm.reshape(C, N, H * W), (1, 0, 2)).reshape(N, C, H, W)


def reference_forward(x65_nchw, x59_nchw, params, matmul_dtype=jnp.float32):
    """Plain-JAX reference of the same computation (correctness check).

    matmul_dtype=bfloat16 reproduces the kernel's mixed-precision recipe exactly;
    float32 gives the full-precision baseline.
    """
    w1 = params["conv1_w"][:, :, 0, 0].astype(matmul_dtype)
    w2 = params["conv2_w"][:, :, 0, 0].astype(matmul_dtype)
    scale = params["bn_gamma"] * lax.rsqrt(params["bn_var"] + _BN_EPS)
    shift = params["bn_beta"] - params["bn_mean"] * scale
    y = jnp.einsum("oc,nchw->nohw", w1, x65_nchw.astype(matmul_dtype),
                   preferred_element_type=jnp.float32)
    y = y * scale[None, :, None, None] + shift[None, :, None, None]
    y = jnp.maximum(x59_nchw + y, 0.0)
    return jnp.einsum("oc,nchw->nohw", w2, y.astype(matmul_dtype),
                      preferred_element_type=jnp.float32)


if __name__ == "__main__":
    key = jax.random.PRNGKey(0)
    kx65, kx59, kw1, kw2, kg, kb, km, kv = jax.random.split(key, 8)

    N, C, H, W = 1, 160, 14, 14  # shapes implied by the module

    x65 = jax.random.normal(kx65, (N, C, H, W), dtype=jnp.float32)
    x59 = jax.random.normal(kx59, (N, C, H, W), dtype=jnp.float32)

    params = {
        "conv1_w": jax.random.normal(kw1, (C, C, 1, 1), dtype=jnp.float32) * 0.05,
        "conv2_w": jax.random.normal(kw2, (C, C, 1, 1), dtype=jnp.float32) * 0.05,
        "bn_gamma": jax.random.normal(kg, (C,), dtype=jnp.float32) * 0.1 + 1.0,
        "bn_beta": jax.random.normal(kb, (C,), dtype=jnp.float32) * 0.1,
        "bn_mean": jax.random.normal(km, (C,), dtype=jnp.float32) * 0.1,
        "bn_var": jax.random.uniform(kv, (C,), dtype=jnp.float32, minval=0.5, maxval=1.5),
    }

    fwd = jax.jit(module_forward)
    out = jax.block_until_ready(fwd(x65, x59, params))

    # Kernel vs. same-precision (bf16-matmul) reference: tight tolerance.
    ref_mixed = jax.block_until_ready(
        reference_forward(x65, x59, params, matmul_dtype=jnp.bfloat16))
    # Kernel vs. full-f32 reference: bounds the bf16-matmul drift.
    ref_f32 = jax.block_until_ready(
        reference_forward(x65, x59, params, matmul_dtype=jnp.float32))

    assert out.shape == (N, C, H, W), out.shape
    assert jnp.allclose(out, ref_mixed, atol=2e-3, rtol=2e-3), "mismatch vs bf16 reference"
    assert jnp.allclose(out, ref_f32, atol=5e-2, rtol=5e-2), "mismatch vs f32 reference"

    print("KERNEL_OK")
</pallas_src>

<mosaic_0001>
module attributes {stable_mosaic.version = 11 : i64} {
  func.func @_fused_kernel(%arg0: memref<160x256xbf16, #tpu.memory_space<vmem>>, %arg1: memref<160x256xf32, #tpu.memory_space<vmem>>, %arg2: memref<160x160xbf16, #tpu.memory_space<vmem>>, %arg3: memref<160x160xbf16, #tpu.memory_space<vmem>>, %arg4: memref<160x1xf32, #tpu.memory_space<vmem>>, %arg5: memref<160x1xf32, #tpu.memory_space<vmem>>, %arg6: memref<160x1xf32, #tpu.memory_space<vmem>>, %arg7: memref<160x1xf32, #tpu.memory_space<vmem>>, %arg8: memref<160x256xf32, #tpu.memory_space<vmem>>) attributes {dimension_semantics = [], scalar_prefetch = 0 : i64, scratch_operands = 0 : i64, tpu.core_type = #tpu.core_type<tc>} {
    %c0 = arith.constant 0 : index
    %c0_0 = arith.constant 0 : index
    %0 = vector.load %arg2[%c0, %c0_0] : memref<160x160xbf16, #tpu.memory_space<vmem>>, vector<160x160xbf16>
    %c0_1 = arith.constant 0 : index
    %c0_2 = arith.constant 0 : index
    %1 = vector.load %arg0[%c0_1, %c0_2] : memref<160x256xbf16, #tpu.memory_space<vmem>>, vector<160x256xbf16>
    %cst = arith.constant dense<0.000000e+00> : vector<160x256xf32>
    %2 = tpu.matmul %0, %1, %cst {dimension_numbers = #tpu.dot_dimension_numbers<[1], [0], [0], [1], [0, 0, 1, 1], [], []>} : vector<160x160xbf16>, vector<160x256xbf16>, vector<160x256xf32> -> vector<160x256xf32>
    %c0_3 = arith.constant 0 : index
    %c0_4 = arith.constant 0 : index
    %3 = vector.load %arg4[%c0_3, %c0_4] : memref<160x1xf32, #tpu.memory_space<vmem>>, vector<160x1xf32>
    %c0_5 = arith.constant 0 : index
    %c0_6 = arith.constant 0 : index
    %4 = vector.load %arg7[%c0_5, %c0_6] : memref<160x1xf32, #tpu.memory_space<vmem>>, vector<160x1xf32>
    %cst_7 = arith.constant 9.99999974E-6 : f32
    %5 = vector.broadcast %cst_7 : f32 to vector<160x1xf32>
    %6 = arith.addf %4, %5 : vector<160x1xf32>
    %7 = math.rsqrt %6 : vector<160x1xf32>
    %8 = arith.mulf %3, %7 : vector<160x1xf32>
    %c0_8 = arith.constant 0 : index
    %c0_9 = arith.constant 0 : index
    %9 = vector.load %arg5[%c0_8, %c0_9] : memref<160x1xf32, #tpu.memory_space<vmem>>, vector<160x1xf32>
    %c0_10 = arith.constant 0 : index
    %c0_11 = arith.constant 0 : index
    %10 = vector.load %arg6[%c0_10, %c0_11] : memref<160x1xf32, #tpu.memory_space<vmem>>, vector<160x1xf32>
    %11 = arith.mulf %10, %8 : vector<160x1xf32>
    %12 = arith.subf %9, %11 : vector<160x1xf32>
    %13 = vector.broadcast %8 : vector<160x1xf32> to vector<160x256xf32>
    %14 = arith.mulf %2, %13 : vector<160x256xf32>
    %15 = vector.broadcast %12 : vector<160x1xf32> to vector<160x256xf32>
    %16 = arith.addf %14, %15 : vector<160x256xf32>
    %c0_12 = arith.constant 0 : index
    %c0_13 = arith.constant 0 : index
    %17 = vector.load %arg1[%c0_12, %c0_13] : memref<160x256xf32, #tpu.memory_space<vmem>>, vector<160x256xf32>
    %18 = arith.addf %16, %17 : vector<160x256xf32>
    %cst_14 = arith.constant 0.000000e+00 : f32
    %19 = vector.broadcast %cst_14 : f32 to vector<160x256xf32>
    %20 = arith.maximumf %18, %19 : vector<160x256xf32>
    %c0_15 = arith.constant 0 : index
    %c0_16 = arith.constant 0 : index
    %21 = vector.load %arg3[%c0_15, %c0_16] : memref<160x160xbf16, #tpu.memory_space<vmem>>, vector<160x160xbf16>
    %22 = arith.truncf %20 : vector<160x256xf32> to vector<160x256xbf16>
    %cst_17 = arith.constant dense<0.000000e+00> : vector<160x256xf32>
    %23 = tpu.matmul %21, %22, %cst_17 {dimension_numbers = #tpu.dot_dimension_numbers<[1], [0], [0], [1], [0, 0, 1, 1], [], []>} : vector<160x160xbf16>, vector<160x256xbf16>, vector<160x256xf32> -> vector<160x256xf32>
    %c0_18 = arith.constant 0 : index
    %c0_19 = arith.constant 0 : index
    %24 = vector.load %arg8[%c0_18, %c0_19] : memref<160x256xf32, #tpu.memory_space<vmem>>, vector<160x256xf32>
    tpu.vector_store %arg8[%c0_18, %c0_19], %23 {strides = array<i32>} : memref<160x256xf32, #tpu.memory_space<vmem>>, vector<160x256xf32>,
    return
  }
}

</mosaic_0001>

<bundles_post_ra>
// kernel: module_forward.1
= control target key start
LH: loop header
LB: loop body
LE: loop exit
PB: predicated region body
PF: predicated region fallthrough
CT: control target
= control target key end

     0   :  { %v1554_v1 = vmov 0   ;;  %vm260_vm0 = vcmask 261120   ;;  %s2386_s0 = inlined_call_operand.vmem [shape: bf16[160,256], index: 0, kind: input, shape index: {}]   ;;  %s2387_s2 = inlined_call_operand.vmem [shape: bf16[160,160], index: 2, kind: input, shape index: {}]   ;;  %s2388_s7 = inlined_call_operand.vmem [shape: f32[160,1], index: 7, kind: input, shape index: {}]   ;;  %s2389_s4 = inlined_call_operand.vmem [shape: f32[160,1], index: 4, kind: input, shape index: {}]   ;;  %s2390_s6 = inlined_call_operand.vmem [shape: f32[160,1], index: 6, kind: input, shape index: {}]   ;;  %s2391_s5 = inlined_call_operand.vmem [shape: f32[160,1], index: 5, kind: input, shape index: {}]   ;;  %s2392_s3 = inlined_call_operand.vmem [shape: bf16[160,160], index: 3, kind: input, shape index: {}]   ;;  %s2393_s1 = inlined_call_operand.vmem [shape: f32[160,256], index: 1, kind: input, shape index: {}]   ;;  %s2394_s8 = inlined_call_operand.vmem [shape: f32[160,256], index: 8, kind: output, shape index: {}]  }
   0x1   :  { %v1424_v0 = vld [vmem:[%s2386_s0 + $0x4] ss:$8 sps:$4 sm:$0xff]   ;;  %1423 = vset.pattern.permute.xlu1 %v1554_v1  ;;  %1422 = vset.pattern.permute.xlu0 %v1554_v1  ;;  %v1426_v2 = vld [vmem:[%s2386_s0] ss:$8 sps:$4 sm:$0xff]   ;;  %v1427_v3 = vld [vmem:[%s2386_s0 + $0x14] ss:$8 sps:$4 sm:$0xff]  }
   0x2   :  { %291 = vmatprep.subr.bf16.mxu0 %v1424_v0  ;;  %v1429_v4 = vld [vmem:[%s2386_s0 + $0x10] ss:$8 sps:$4 sm:$0xff]   ;;  %v1430_v5 = vld [vmem:[%s2386_s0 + $0x24] ss:$8 sps:$4 sm:$0xff]   ;;  %v1432_v6 = vld [vmem:[%s2386_s0 + $0x20] ss:$8 sps:$4 sm:$0xff]  }
   0x3   :  { %292 = vmatpush1.bf16.msra.mxu0 %v1426_v2  ;;  %v1433_v7 = vld [vmem:[%s2386_s0 + $0x34] ss:$8 sps:$4 sm:$0xff]   ;;  %v1435_v8 = vld [vmem:[%s2386_s0 + $0x30] ss:$8 sps:$4 sm:$0xff]   ;;  %v1436_v9 = vld [vmem:[%s2386_s0 + $0x44] ss:$8 sps:$4 sm:$0xff]  }
   0x4   :  { %293 = vmatprep.subr.bf16.mxu0 %v1427_v3  ;;  %v1456_v10 = vld [vmem:[%s2387_s2 + $0x4] ss:$8 sps:$4 sm:$0xff]   ;;  %v1438_v11 = vld [vmem:[%s2386_s0 + $0x40] ss:$8 sps:$4 sm:$0xff]   ;;  %v1439_v12 = vld [vmem:[%s2386_s0 + $0x54] ss:$8 sps:$4 sm:$0xff]  }
   0x5   :  { %1381 = vmatprep.mubr.msk.bf16.mxu0 %vm260_vm0, %v1456_v10  ;;  %v447_v13 = vld [vmem:[%s2388_s7 + $0x18] sm:$0xff]  ;;  %v444_v15 = vld [vmem:[%s2388_s7] sm:$0xff]  ;;  %v449_v18 = vld [vmem:[%s2388_s7 + $0x28] sm:$0xff] }
   0x6   :  { %v467_v14 = vadd.f32 1e-05, %v447_v13  ;;  %v1441_v16 = vld [vmem:[%s2386_s0 + $0x50] ss:$8 sps:$4 sm:$0xff]   ;;  %v464_v17 = vadd.f32 1e-05, %v444_v15 }
   0x7   :  { %294 = vmatpush1.bf16.msra.mxu0 %v1429_v4  ;;  %v469_v19 = vadd.f32 1e-05, %v449_v18  ;;  %v445_v20 = vld [vmem:[%s2388_s7 + $0x8] sm:$0xff]  ;;  %v446_v23 = vld [vmem:[%s2388_s7 + $0x10] sm:$0xff]  ;;  %v448_v25 = vld [vmem:[%s2388_s7 + $0x20] sm:$0xff] }
   0x8   :  { %295 = vmatprep.subr.bf16.mxu0 %v1430_v5  ;;  %1514 = vrsqrt.f32 %v467_v14  ;;  %v1442_v21 = vld [vmem:[%s2386_s0 + $0x64] ss:$8 sps:$4 sm:$0xff]   ;;  %v465_v22 = vadd.f32 1e-05, %v445_v20  ;;  %v466_v24 = vadd.f32 1e-05, %v446_v23 }
   0x9   :  { %1516 = vrsqrt.f32 %v464_v17  ;;  %v1444_v26 = vld [vmem:[%s2386_s0 + $0x60] ss:$8 sps:$4 sm:$0xff]   ;;  %v1445_v27 = vld [vmem:[%s2386_s0 + $0x74] ss:$8 sps:$4 sm:$0xff]   ;;  %v468_v28 = vadd.f32 1e-05, %v448_v25 }
   0xa   :  { %1518 = vrsqrt.f32 %v469_v19  ;;  %v1447_v29 = vld [vmem:[%s2386_s0 + $0x70] ss:$8 sps:$4 sm:$0xff]   ;;  %v1448_v31 = vld [vmem:[%s2386_s0 + $0x84] ss:$8 sps:$4 sm:$0xff]   ;;  %v1450_v42 = vld [vmem:[%s2386_s0 + $0x80] ss:$8 sps:$4 sm:$0xff]  }
   0xb   :  { %296 = vmatpush1.bf16.msra.mxu0 %v1432_v6  ;;  %1520 = vrsqrt.f32 %v465_v22  ;;  %v427_v30 = vld [vmem:[%s2389_s4 + $0x18] sm:$0xff]  ;;  %v424_v32 = vld [vmem:[%s2389_s4] sm:$0xff]  ;;  %v429_v34 = vld [vmem:[%s2389_s4 + $0x28] sm:$0xff] }
   0xc   :  { %297 = vmatprep.subr.bf16.mxu0 %v1433_v7  ;;  %1522 = vrsqrt.f32 %v466_v24  ;;  %v450_v35 = vld [vmem:[%s2388_s7 + $0x30] sm:$0xff]  ;;  %v451_v36 = vld [vmem:[%s2388_s7 + $0x38] sm:$0xff]  ;;  %v544_v39 = vld [vmem:[%s2390_s6] sm:$0xff] }
   0xd   :  { %1524 = vrsqrt.f32 %v468_v28  ;;  %v425_v40 = vld [vmem:[%s2389_s4 + $0x8] sm:$0xff]  ;;  %v471_v44 = vadd.f32 1e-05, %v451_v36  ;;  %v1451_v46 = vld [vmem:[%s2386_s0 + $0x94] ss:$8 sps:$4 sm:$0xff]   ;;  %v524_v51 = vld [vmem:[%s2391_s5] sm:$0xff] }
   0xe   :  { %v470_v48 = vadd.f32 1e-05, %v450_v35  ;;  %v545_v52 = vld [vmem:[%s2390_s6 + $0x8] sm:$0xff]  ;;  %v426_v54 = vld [vmem:[%s2389_s4 + $0x10] sm:$0xff]  ;;  %v547_v59 = vld [vmem:[%s2390_s6 + $0x18] sm:$0xff] }
   0xf   :  { %298 = vmatpush1.bf16.msra.mxu0 %v1435_v8  ;;  %v1453_v55 = vld [vmem:[%s2386_s0 + $0x90] ss:$8 sps:$4 sm:$0xff]   ;;  %1526 = vrsqrt.f32 %v471_v44  ;;  %v453_v58 = vld [vmem:[%s2388_s7 + $0x48] sm:$0xff]  ;;  %v452_v62 = vld [vmem:[%s2388_s7 + $0x40] sm:$0xff] }
  0x10   :  { %299 = vmatprep.subr.bf16.mxu0 %v1436_v9  ;;  %1528 = vrsqrt.f32 %v470_v48  ;;  %v525_v61 = vld [vmem:[%s2391_s5 + $0x8] sm:$0xff]  ;;  %v428_v1 = vld [vmem:[%s2389_s4 + $0x20] sm:$0xff]  ;;  %v546_v2 = vld [vmem:[%s2390_s6 + $0x10] sm:$0xff]  ;;  %v473_v4 = vadd.f32 1e-05, %v453_v58 }
  0x11   :  { %v1454_v0 = vld [vmem:[%s2387_s2] ss:$8 sps:$4 sm:$0xff]   ;;  %v1457_v3 = vld [vmem:[%s2387_s2 + $0x14] ss:$8 sps:$4 sm:$0xff]   ;;  %v472_v7 = vadd.f32 1e-05, %v452_v62 }
  0x12   :  { %v1515_v33 = vpop.eup %1514  ;;  %v527_v10 = vld [vmem:[%s2391_s5 + $0x18] sm:$0xff]  ;;  %v548_v13 = vld [vmem:[%s2390_s6 + $0x20] sm:$0xff]  ;;  %v454_v14 = vld [vmem:[%s2388_s7 + $0x50] sm:$0xff]  ;;  %1530 = vrsqrt.f32 %v473_v4 }
  0x13   :  { %300 = vmatpush1.bf16.msra.mxu0 %v1438_v11  ;;  %v1517_v37 = vpop.eup %1516  ;;  %v507_v38 = vmul.f32 %v1515_v33, %v427_v30  ;;  %v549_v11 = vld [vmem:[%s2390_s6 + $0x28] sm:$0xff]  ;;  %v455_v15 = vld [vmem:[%s2388_s7 + $0x58] sm:$0xff]  ;;  %1532 = vrsqrt.f32 %v472_v7  ;;  %v474_v23 = vadd.f32 1e-05, %v454_v14  ;;  %v434_v14 = vld [vmem:[%s2389_s4 + $0x50] sm:$0xff] }
  0x14   :  { %301 = vmatprep.subr.bf16.mxu0 %v1439_v12  ;;  %v1519_v41 = vpop.eup %1518  ;;  %v504_v43 = vmul.f32 %v1517_v37, %v424_v32  ;;  %v526_v12 = vld [vmem:[%s2391_s5 + $0x10] sm:$0xff]  ;;  %v431_v22 = vld [vmem:[%s2389_s4 + $0x38] sm:$0xff]  ;;  %v475_v28 = vadd.f32 1e-05, %v455_v15  ;;  %v460_v32 = vld [vmem:[%s2388_s7 + $0x80] sm:$0xff] }
  0x15   :  { %v1521_v45 = vpop.eup %1520  ;;  %621 = vperm.xlu1 %1423, %v507_v38   ;;  %v509_v47 = vmul.f32 %v1519_v41, %v429_v34  ;;  %v567_v5 = vmul.f32 %v547_v59, %v507_v38  ;;  %v1459_v25 = vld [vmem:[%s2387_s2 + $0x10] ss:$8 sps:$4 sm:$0xff]   ;;  %1534 = vrsqrt.f32 %v474_v23  ;;  %v480_v36 = vadd.f32 1e-05, %v460_v32  ;;  %v461_v37 = vld [vmem:[%s2388_s7 + $0x88] sm:$0xff] }
  0x16   :  { %606 = vperm.xlu0 %1422, %v504_v43   ;;  %v564_v49 = vmul.f32 %v544_v39, %v504_v43  ;;  %v505_v50 = vmul.f32 %v1521_v45, %v425_v40  ;;  %v1523_v53 = vpop.eup %1522  ;;  %v551_v35 = vld [vmem:[%s2390_s6 + $0x38] sm:$0xff]  ;;  %v550_v38 = vld [vmem:[%s2390_s6 + $0x30] sm:$0xff]  ;;  %1536 = vrsqrt.f32 %v475_v28  ;;  %v481_v39 = vadd.f32 1e-05, %v461_v37  ;;  %v433_v48 = vld [vmem:[%s2389_s4 + $0x48] sm:$0xff] }
  0x17   :  { %302 = vmatpush1.bf16.msra.mxu0 %v1441_v16  ;;  %v506_v60 = vmul.f32 %v1523_v53, %v426_v54  ;;  %v1525_v63 = vpop.eup %1524  ;;  %v587_v16 = vsub.f32 %v527_v10, %v567_v5  ;;  %v569_v17 = vmul.f32 %v549_v11, %v509_v47  ;;  %1538 = vrsqrt.f32 %v480_v36  ;;  %v462_v40 = vld [vmem:[%s2388_s7 + $0x90] sm:$0xff]  ;;  %v463_v44 = vld [vmem:[%s2388_s7 + $0x98] sm:$0xff]  ;;  %v432_v54 = vld [vmem:[%s2389_s4 + $0x40] sm:$0xff] }
  0x18   :  { %303 = vmatprep.subr.bf16.mxu0 %v1442_v21  ;;  %v584_v56 = vsub.f32 %v524_v51, %v564_v49  ;;  %v565_v57 = vmul.f32 %v545_v52, %v505_v50  ;;  %v508_v8 = vmul.f32 %v1525_v63, %v428_v1  ;;  %v529_v21 = vld [vmem:[%s2391_s5 + $0x28] sm:$0xff]  ;;  %1540 = vrsqrt.f32 %v481_v39  ;;  %v456_v49 = vld [vmem:[%s2388_s7 + $0x60] sm:$0xff]  ;;  %v530_v53 = vld [vmem:[%s2391_s5 + $0x30] sm:$0xff] }
  0x19   :  { %631 = vperm.xlu1 %1423, %v509_v47   ;;  %v566_v9 = vmul.f32 %v546_v2, %v506_v60  ;;  %v1527_v18 = vpop.eup %1526  ;;  %v589_v30 = vsub.f32 %v529_v21, %v569_v17  ;;  %v482_v43 = vadd.f32 1e-05, %v462_v40  ;;  %v531_v47 = vld [vmem:[%s2391_s5 + $0x38] sm:$0xff]  ;;  %v1462_v52 = vld [vmem:[%s2387_s2 + $0x20] ss:$8 sps:$4 sm:$0xff]   ;;  %v458_v11 = vld [vmem:[%s2388_s7 + $0x70] sm:$0xff] }
  0x1a   :  { %611 = vperm.xlu0 %1422, %v505_v50   ;;  %v585_v6 = vsub.f32 %v525_v61, %v565_v57  ;;  %v568_v20 = vmul.f32 %v548_v13, %v508_v8  ;;  %v1529_v24 = vpop.eup %1528  ;;  %v483_v50 = vadd.f32 1e-05, %v463_v44  ;;  %v476_v59 = vadd.f32 1e-05, %v456_v49  ;;  %v553_v62 = vld [vmem:[%s2390_s6 + $0x48] sm:$0xff]  ;;  %v552_v63 = vld [vmem:[%s2390_s6 + $0x40] sm:$0xff] }
  0x1b   :  { %304 = vmatpush1.bf16.msra.mxu0 %v1444_v26  ;;  %v586_v19 = vsub.f32 %v526_v12, %v566_v9  ;;  %v528_v26 = vld [vmem:[%s2391_s5 + $0x20] sm:$0xff]  ;;  %1542 = vrsqrt.f32 %v482_v43  ;;  %v459_v5 = vld [vmem:[%s2388_s7 + $0x78] sm:$0xff]  ;;  %v533_v9 = vld [vmem:[%s2391_s5 + $0x48] sm:$0xff] }
  0x1c   :  { %305 = vmatprep.subr.bf16.mxu0 %v1445_v27  ;;  %v430_v27 = vld [vmem:[%s2389_s4 + $0x30] sm:$0xff]  ;;  %v588_v33 = vsub.f32 %v528_v26, %v568_v20  ;;  %v1531_v45 = vpop.eup %1530  ;;  %1544 = vrsqrt.f32 %v483_v50  ;;  %v440_v1 = vld [vmem:[%s2389_s4 + $0x80] sm:$0xff]  ;;  %v435_v10 = vld [vmem:[%s2389_s4 + $0x58] sm:$0xff] }
  0x1d   :  { %746 = vperm.xlu1 %1423, %v584_v56   ;;  %v510_v34 = vmul.f32 %v1529_v24, %v430_v27  ;;  %v1533_v51 = vpop.eup %1532  ;;  %v513_v58 = vmul.f32 %v1531_v45, %v433_v48  ;;  %v532_v13 = vld [vmem:[%s2391_s5 + $0x40] sm:$0xff]  ;;  %v443_v20 = vld [vmem:[%s2389_s4 + $0x98] sm:$0xff]  ;;  %v478_v24 = vadd.f32 1e-05, %v458_v11  ;;  %v554_v32 = vld [vmem:[%s2390_s6 + $0x50] sm:$0xff] }
  0x1e   :  { %616 = vperm.xlu0 %1422, %v506_v60   ;;  %v512_v61 = vmul.f32 %v1533_v51, %v432_v54  ;;  %v1466_v17 = vld [vmem:[%s2387_s2 + $0x44] ss:$8 sps:$4 sm:$0xff]   ;;  %v1891_v36 = vld [vmem:[%s2391_s5 + $0x98] sm:$0xff]  ;;  %v1468_v45 = vld [vmem:[%s2387_s2 + $0x40] ss:$8 sps:$4 sm:$0xff]  }
  0x1f   :  { %306 = vmatpush1.bf16.msra.mxu0 %v1447_v29  ;;  %v1460_v29 = vld [vmem:[%s2387_s2 + $0x24] ss:$8 sps:$4 sm:$0xff]   ;;  %v573_v4 = vmul.f32 %v553_v62, %v513_v58  ;;  %v1469_v49 = vld [vmem:[%s2387_s2 + $0x54] ss:$8 sps:$4 sm:$0xff]   ;;  %v1471_v62 = vld [vmem:[%s2387_s2 + $0x50] ss:$8 sps:$4 sm:$0xff]  }
  0x20   :  { %307 = vmatprep.subr.bf16.mxu0 %v1448_v31  ;;  %v511_v31 = vmul.f32 %v1527_v18, %v431_v22  ;;  %v479_v18 = vadd.f32 1e-05, %v459_v5  ;;  %v557_v54 = vld [vmem:[%s2390_s6 + $0x68] sm:$0xff] }
  0x21   :  { %751 = vperm.xlu1 %1423, %v585_v6   ;;  %v441_v6 = vld [vmem:[%s2389_s4 + $0x88] sm:$0xff]  ;;  %v593_v22 = vsub.f32 %v533_v9, %v573_v4 }
  0x22   :  { %626 = vperm.xlu0 %1422, %v508_v8   ;;  %v571_v41 = vmul.f32 %v551_v35, %v511_v31  ;;  %v572_v8 = vmul.f32 %v552_v63, %v512_v61  ;;  %v536_v63 = vld [vmem:[%s2391_s5 + $0x60] sm:$0xff] }
  0x23   :  { %308 = vmatpush1.bf16.msra.mxu0 %v1450_v42  ;;  %v457_v42 = vld [vmem:[%s2388_s7 + $0x68] sm:$0xff] }
  0x24   :  { %309 = vmatprep.subr.bf16.mxu0 %v1451_v46  ;;  %v570_v46 = vmul.f32 %v550_v38, %v510_v34  ;;  %v477_v56 = vadd.f32 1e-05, %v457_v42  ;;  %v591_v57 = vsub.f32 %v531_v47, %v571_v41  ;;  %v592_v27 = vsub.f32 %v532_v13, %v572_v8  ;;  %v535_v41 = vld [vmem:[%s2391_s5 + $0x58] sm:$0xff]  ;;  %v437_v42 = vld [vmem:[%s2389_s4 + $0x68] sm:$0xff]  ;;  %v436_v47 = vld [vmem:[%s2389_s4 + $0x60] sm:$0xff] }
  0x25   :  { %761 = vperm.xlu1 %1423, %v587_v16   ;;  %v442_v16 = vld [vmem:[%s2389_s4 + $0x90] sm:$0xff]  ;;  %v1474_v11 = vld [vmem:[%s2387_s2 + $0x60] ss:$8 sps:$4 sm:$0xff]  }
  0x26   :  { %756 = vperm.xlu0 %1422, %v586_v19   ;;  %v590_v60 = vsub.f32 %v530_v53, %v570_v46  ;;  %1546 = vrsqrt.f32 %v477_v56  ;;  %v534_v46 = vld [vmem:[%s2391_s5 + $0x50] sm:$0xff] }
  0x27   :  { %310 = vmatpush1.bf16.msra.mxu0 %v1453_v55  ;;  %v1463_v55 = vld [vmem:[%s2387_s2 + $0x34] ss:$8 sps:$4 sm:$0xff]   ;;  %1548 = vrsqrt.f32 %v476_v59  ;;  %v537_v59 = vld [vmem:[%s2391_s5 + $0x68] sm:$0xff] }
  0x28   :  { %1550 = vrsqrt.f32 %v479_v18  ;;  %v1475_v13 = vld [vmem:[%s2387_s2 + $0x74] ss:$8 sps:$4 sm:$0xff]   ;;  %v560_v18 = vld [vmem:[%s2390_s6 + $0x80] sm:$0xff] }
  0x29   :  { %771 = vperm.xlu1 %1423, %v589_v30   ;;  %1552 = vrsqrt.f32 %v478_v24  ;;  %v540_v24 = vld [vmem:[%s2391_s5 + $0x80] sm:$0xff] }
  0x2a   :  { %324 = vmatmul.mubr.bf16.vlgmr.msra.gmra.mrb[0].mxu0 %v1454_v0  ;;  %766 = vperm.xlu0 %1422, %v588_v33   ;;  %v1535_v0 = vpop.eup %1534 }
  0x2b   :  { %1382 = vmatprep.mubr.msk.bf16.mxu0 %vm260_vm0, %v1457_v3  ;;  %v1537_v2 = vpop.eup %1536  ;;  %v1465_v3 = vld [vmem:[%s2387_s2 + $0x30] ss:$8 sps:$4 sm:$0xff]   ;;  %v514_v28 = vmul.f32 %v1535_v0, %v434_v14 }
  0x2c   :  { %v1539_v7 = vpop.eup %1538  ;;  %v515_v23 = vmul.f32 %v1537_v2, %v435_v10  ;;  %v438_v0 = vld [vmem:[%s2389_s4 + $0x70] sm:$0xff]  ;;  %v539_v10 = vld [vmem:[%s2391_s5 + $0x78] sm:$0xff] }
  0x2d   :  { %641 = vperm.xlu1 %1423, %v511_v31   ;;  %v1541_v12 = vpop.eup %1540  ;;  %v1850_v15 = vmul.f32 %v1539_v7, %v440_v1  ;;  %v563_v31 = vld [vmem:[%s2390_s6 + $0x98] sm:$0xff]  ;;  %v574_v40 = vmul.f32 %v554_v32, %v514_v28  ;;  %v1472_v1 = vld [vmem:[%s2387_s2 + $0x64] ss:$8 sps:$4 sm:$0xff]   ;;  %v558_v7 = vld [vmem:[%s2390_s6 + $0x70] sm:$0xff] }
  0x2e   :  { %636 = vperm.xlu0 %1422, %v510_v34   ;;  %v1858_v19 = vmul.f32 %v1541_v12, %v441_v6  ;;  %v1543_v21 = vpop.eup %1542  ;;  %v1882_v34 = vld [vmem:[%s2391_s5 + $0x90] sm:$0xff]  ;;  %v559_v6 = vld [vmem:[%s2390_s6 + $0x78] sm:$0xff] }
  0x2f   :  { %v1545_v26 = vpop.eup %1544  ;;  %v1869_v30 = vmul.f32 %v1543_v21, %v442_v16  ;;  %v538_v12 = vld [vmem:[%s2391_s5 + $0x70] sm:$0xff]  ;;  %v580_v21 = vmul.f32 %v560_v18, %v1850_v15 }
  0x30   :  { %v1877_v33 = vmul.f32 %v1545_v26, %v443_v20  ;;  %v1547_v39 = vpop.eup %1546 }
  0x31   :  { %781 = vperm.xlu1 %1423, %v591_v57   ;;  %v1549_v44 = vpop.eup %1548  ;;  %v517_v51 = vmul.f32 %v1547_v39, %v437_v42 }
  0x32   :  { %334 = vmatmul.mubr.bf16.gmra.mrb[4].mxu0 %v1459_v25  ;;  %776 = vperm.xlu0 %1422, %v590_v60   ;;  %v562_v25 = vld [vmem:[%s2390_s6 + $0x90] sm:$0xff]  ;;  %v1894_v38 = vmul.f32 %v563_v31, %v1877_v33  ;;  %v516_v53 = vmul.f32 %v1549_v44, %v436_v47  ;;  %v1551_v57 = vpop.eup %1550  ;;  %v439_v60 = vld [vmem:[%s2389_s4 + $0x78] sm:$0xff] }
  0x33   :  { %1383 = vmatprep.mubr.msk.bf16.mxu0 %vm260_vm0, %v1460_v29  ;;  %v555_v29 = vld [vmem:[%s2390_s6 + $0x58] sm:$0xff]  ;;  %v1886_v35 = vmul.f32 %v562_v25, %v1869_v30  ;;  %v577_v56 = vmul.f32 %v557_v54, %v517_v51  ;;  %v1478_v25 = vld [vmem:[%s2387_s2 + $0x84] ss:$8 sps:$4 sm:$0xff]  }
  0x34   :  { %v575_v37 = vmul.f32 %v555_v29, %v515_v23  ;;  %v603_v48 = vsub.f32 %v1891_v36, %v1894_v38  ;;  %v1481_v29 = vld [vmem:[%s2387_s2 + $0x94] ss:$8 sps:$4 sm:$0xff]   ;;  %v885_v54 = vld [vmem:[%s2393_s1 + $0x8] sm:$0xff] }
  0x35   :  { %651 = vperm.xlu1 %1423, %v513_v58   ;;  %v602_v43 = vsub.f32 %v1882_v34, %v1886_v35  ;;  %v597_v2 = vsub.f32 %v537_v59, %v577_v56 }
  0x36   :  { %646 = vperm.xlu0 %1422, %v512_v61   ;;  %v595_v50 = vsub.f32 %v535_v41, %v575_v37  ;;  %v1553_v61 = vpop.eup %1552 }
  0x37   :  { %v518_v5 = vmul.f32 %v1553_v61, %v438_v0 }
  0x39   :  { %791 = vperm.xlu1 %1423, %v593_v22   ;;  %v578_v9 = vmul.f32 %v558_v7, %v518_v5  ;;  %v541_v22 = vld [vmem:[%s2391_s5 + $0x88] sm:$0xff] }
  0x3a   :  { %344 = vmatmul.mubr.bf16.gmra.mrb[8].mxu0 %v1462_v52  ;;  %786 = vperm.xlu0 %1422, %v592_v27   ;;  %v594_v52 = vsub.f32 %v534_v46, %v574_v40  ;;  %v600_v27 = vsub.f32 %v540_v24, %v580_v21 }
  0x3b   :  { %1384 = vmatprep.mubr.msk.bf16.mxu0 %vm260_vm0, %v1463_v55  ;;  %v556_v55 = vld [vmem:[%s2390_s6 + $0x60] sm:$0xff]  ;;  %v598_v16 = vsub.f32 %v538_v12, %v578_v9 }
  0x3c   :  { %v576_v58 = vmul.f32 %v556_v55, %v516_v53  ;;  %v888_v9 = vld [vmem:[%s2393_s1 + $0x20] sm:$0xff] }
  0x3d   :  { %661 = vperm.xlu1 %1423, %v515_v23   ;;  %v1477_v23 = vld [vmem:[%s2387_s2 + $0x70] ss:$8 sps:$4 sm:$0xff]  }
  0x3e   :  { %656 = vperm.xlu0 %1422, %v514_v28   ;;  %v596_v4 = vsub.f32 %v536_v63, %v576_v58  ;;  %v1480_v28 = vld [vmem:[%s2387_s2 + $0x80] ss:$8 sps:$4 sm:$0xff]   ;;  %v886_v58 = vld [vmem:[%s2393_s1 + $0x10] sm:$0xff] }
  0x41   :  { %801 = vperm.xlu1 %1423, %v595_v50   ;;  %v884_v50 = vld [vmem:[%s2393_s1] sm:$0xff] }
  0x42   :  { %354 = vmatmul.mubr.bf16.gmra.mrb[12].mxu0 %v1465_v3  ;;  %796 = vperm.xlu0 %1422, %v594_v52   ;;  %v519_v3 = vmul.f32 %v1551_v57, %v439_v60  ;;  %v887_v60 = vld [vmem:[%s2393_s1 + $0x18] sm:$0xff] }
  0x43   :  { %1385 = vmatprep.mubr.msk.bf16.mxu0 %vm260_vm0, %v1466_v17  ;;  %v561_v17 = vld [vmem:[%s2390_s6 + $0x88] sm:$0xff] }
  0x44   :  { %v579_v8 = vmul.f32 %v559_v6, %v519_v3  ;;  %v581_v20 = vmul.f32 %v561_v17, %v1858_v19 }
  0x45   :  { %671 = vperm.xlu1 %1423, %v517_v51  }
  0x46   :  { %666 = vperm.xlu0 %1422, %v516_v53   ;;  %v599_v14 = vsub.f32 %v539_v10, %v579_v8  ;;  %v601_v26 = vsub.f32 %v541_v22, %v581_v20  ;;  %v890_v22 = vld [vmem:[%s2393_s1 + $0x30] sm:$0xff] }
  0x49   :  { %811 = vperm.xlu1 %1423, %v597_v2  }
  0x4a   :  { %364 = vmatmul.mubr.bf16.gmra.mrb[16].mxu0 %v1468_v45  ;;  %806 = vperm.xlu0 %1422, %v596_v4  }
  0x4b   :  { %1386 = vmatprep.mubr.msk.bf16.mxu0 %vm260_vm0, %v1469_v49 }
  0x4d   :  { %681 = vperm.xlu1 %1423, %v519_v3  }
  0x4e   :  { %676 = vperm.xlu0 %1422, %v518_v5  }
  0x51   :  { %821 = vperm.xlu1 %1423, %v599_v14  }
  0x52   :  { %374 = vmatmul.mubr.bf16.gmra.mrb[20].mxu0 %v1471_v62  ;;  %816 = vperm.xlu0 %1422, %v598_v16   ;;  %v889_v16 = vld [vmem:[%s2393_s1 + $0x28] sm:$0xff] }
  0x53   :  { %1387 = vmatprep.mubr.msk.bf16.mxu0 %vm260_vm0, %v1472_v1 }
  0x55   :  { %691 = vperm.xlu1 %1423, %v1858_v19  }
  0x56   :  { %686 = vperm.xlu0 %1422, %v1850_v15   ;;  %v1483_v15 = vld [vmem:[%s2387_s2 + $0x90] ss:$8 sps:$4 sm:$0xff]  }
  0x59   :  { %831 = vperm.xlu1 %1423, %v601_v26  }
  0x5a   :  { %384 = vmatmul.mubr.bf16.gmra.mrb[24].mxu0 %v1474_v11  ;;  %826 = vperm.xlu0 %1422, %v600_v27   ;;  %v891_v27 = vld [vmem:[%s2393_s1 + $0x38] sm:$0xff] }
  0x5b   :  { %1388 = vmatprep.mubr.msk.bf16.mxu0 %vm260_vm0, %v1475_v13 }
  0x5d   :  { %701 = vperm.xlu1 %1423, %v1877_v33  }
  0x5e   :  { %696 = vperm.xlu0 %1422, %v1869_v30   ;;  %v1486_v30 = vld [vmem:[%s2392_s3 + $0x4] ss:$8 sps:$4 sm:$0xff]  }
  0x5f   :  { %1411 = vmatprep.mubr.msk.bf16.mxu1 %vm260_vm0, %v1486_v30 }
  0x61   :  { %841 = vperm.xlu1 %1423, %v603_v48  }
  0x62   :  { %394 = vmatmul.mubr.bf16.gmra.mrb[28].mxu0 %v1477_v23  ;;  %836 = vperm.xlu0 %1422, %v602_v43  }
  0x63   :  { %1389 = vmatprep.mubr.msk.bf16.mxu0 %vm260_vm0, %v1478_v25 }
  0x6a   :  { %404 = vmatmul.mubr.bf16.gmra.mrb[32].mxu0 %v1480_v28 }
  0x6b   :  { %1390 = vmatprep.mubr.msk.bf16.mxu0 %vm260_vm0, %v1481_v29 }
  0x72   :  { %414 = vmatmul.mubr.bf16.gmra.mrb[36].mxu0 %v1483_v15 }
  0x94   :  { %v622_v31 = vpop.permute.xlu1 %621 }
  0x95   :  { %v607_v19 = vpop.permute.xlu0 %606 }
  0x98   :  { %v2008_v33 = vpop.permute.xlu1 %631 }
  0x99   :  { %v612_v32 = vpop.permute.xlu0 %611 }
  0x9c   :  { %v747_v37 = vpop.permute.xlu1 %746 }
  0x9d   :  { %v617_v36 = vpop.permute.xlu0 %616 }
  0xa0   :  { %v752_v35 = vpop.permute.xlu1 %751 }
  0xa1   :  { %v2010_v34 = vpop.permute.xlu0 %626 }
  0xa4   :  { %v762_v39 = vpop.permute.xlu1 %761 }
  0xa5   :  { %v757_v38 = vpop.permute.xlu0 %756 }
  0xa8   :  { %v2014_v41 = vpop.permute.xlu1 %771 }
  0xa9   :  { %v2012_v40 = vpop.permute.xlu0 %766 }
  0xac   :  { %v2018_v43 = vpop.permute.xlu1 %641 }
  0xad   :  { %v2016_v42 = vpop.permute.xlu0 %636 }
  0xb0   :  { %v2028_v55 = vpop.permute.xlu1 %781 }
  0xb1   :  { %v2020_v47 = vpop.permute.xlu0 %776 }
  0xb4   :  { %v2038_v8 = vpop.permute.xlu1 %651 }
  0xb5   :  { %v2036_v1 = vpop.permute.xlu0 %646 }
  0xb8   :  { %v2054_v30 = vpop.permute.xlu1 %791 }
  0xb9   :  { %v2052_v28 = vpop.permute.xlu0 %786 }
  0xfd   :  { %v325_v44 = vpop.f32.mrb[0].mxu0 }
  0xfe   :  { %v704_v45 = vmul.f32 %v607_v19, %v325_v44  ;;  %v327_v46 = vpop.f32.mrb[1].mxu0 }
  0xff   :  { %v705_v48 = vmul.f32 %v607_v19, %v327_v46  ;;  %v329_v49 = vpop.f32.mrb[2].mxu0  ;;  %v892_v46 = vld [vmem:[%s2393_s1 + $0x40] sm:$0xff] }
 0x100   :  { %v844_v51 = vadd.f32 %v747_v37, %v704_v45  ;;  %v706_v52 = vmul.f32 %v612_v32, %v329_v49  ;;  %v331_v53 = vpop.f32.mrb[3].mxu0 }
 0x101   :  { %v845_v56 = vadd.f32 %v747_v37, %v705_v48  ;;  %v707_v57 = vmul.f32 %v612_v32, %v331_v53 }
 0x102   :  { %v846_v59 = vadd.f32 %v752_v35, %v706_v52  ;;  %v924_v61 = vadd.f32 %v884_v50, %v844_v51  ;;  %v893_v50 = vld [vmem:[%s2393_s1 + $0x48] sm:$0xff] }
 0x103   :  { %v847_v62 = vadd.f32 %v752_v35, %v707_v57  ;;  %v925_v63 = vadd.f32 %v885_v54, %v845_v56  ;;  %v2066_v54 = vpop.permute.xlu0 %656  ;;  %v894_v57 = vld [vmem:[%s2393_s1 + $0x50] sm:$0xff] }
 0x104   :  { %v926_v0 = vadd.f32 %v886_v58, %v846_v59  ;;  %v964_v6 = vmax.f32 %v924_v61, 0.0  ;;  %v895_v61 = vld [vmem:[%s2393_s1 + $0x58] sm:$0xff] }
 0x105   :  { %v335_v2 = vpop.f32.mrb[4].mxu0  ;;  %v927_v3 = vadd.f32 %v887_v60, %v847_v62  ;;  %v965_v12 = vmax.f32 %v925_v63, 0.0  ;;  %v2077_v62 = vpop.permute.xlu1 %661 }
 0x106   :  { %v708_v4 = vmul.f32 %v617_v36, %v335_v2  ;;  %v337_v5 = vpop.f32.mrb[5].mxu0  ;;  %v966_v7 = vmax.f32 %v926_v0, 0.0 }
 0x107   :  { %v709_v10 = vmul.f32 %v617_v36, %v337_v5  ;;  %v339_v11 = vpop.f32.mrb[6].mxu0  ;;  %v967_v13 = vmax.f32 %v927_v3, 0.0 }
 0x108   :  { %v848_v14 = vadd.f32 %v757_v38, %v708_v4  ;;  %v710_v17 = vmul.f32 %v622_v31, %v339_v11  ;;  %v341_v18 = vpop.f32.mrb[7].mxu0  ;;  %v1024_v20 = vpack.c.bf16 %v966_v7, %v964_v6  ;;  %v2081_v7 = vpop.permute.xlu0 %796  ;;  %v896_v11 = vld [vmem:[%s2393_s1 + $0x60] sm:$0xff] }
 0x109   :  { %v849_v21 = vadd.f32 %v757_v38, %v709_v10  ;;  %v711_v23 = vmul.f32 %v622_v31, %v341_v18  ;;  %v1025_v24 = vpack.c.bf16 %v967_v13, %v965_v12 }
 0x10a   :  { %v928_v25 = vadd.f32 %v888_v9, %v848_v14  ;;  %v850_v26 = vadd.f32 %v762_v39, %v710_v17  ;;  %v897_v14 = vld [vmem:[%s2393_s1 + $0x68] sm:$0xff] }
 0x10b   :  { %v929_v29 = vadd.f32 %v889_v16, %v849_v21  ;;  %v851_v15 = vadd.f32 %v762_v39, %v711_v23  ;;  %1164 = vmatprep.subr.bf16.mxu1 %v1025_v24 }
 0x10c   :  { %v930_v19 = vadd.f32 %v890_v22, %v850_v26  ;;  %1165 = vmatpush1.bf16.msra.mxu1 %v1024_v20  ;;  %v968_v37 = vmax.f32 %v928_v25, 0.0  ;;  %v2092_v20 = vpop.permute.xlu1 %801  ;;  %v898_v22 = vld [vmem:[%s2393_s1 + $0x70] sm:$0xff]  ;;  %v899_v26 = vld [vmem:[%s2393_s1 + $0x78] sm:$0xff] }
 0x10d   :  { %v931_v32 = vadd.f32 %v891_v27, %v851_v15  ;;  %v345_v36 = vpop.f32.mrb[8].mxu0  ;;  %v969_v44 = vmax.f32 %v929_v29, 0.0 }
 0x10e   :  { %v970_v31 = vmax.f32 %v930_v19, 0.0  ;;  %v712_v35 = vmul.f32 %v2010_v34, %v345_v36  ;;  %v347_v38 = vpop.f32.mrb[9].mxu0 }
 0x10f   :  { %v971_v45 = vmax.f32 %v931_v32, 0.0  ;;  %v713_v39 = vmul.f32 %v2010_v34, %v347_v38  ;;  %v349_v48 = vpop.f32.mrb[10].mxu0 }
 0x110   :  { %v852_v49 = vadd.f32 %v2012_v40, %v712_v35  ;;  %v714_v51 = vmul.f32 %v2008_v33, %v349_v48  ;;  %v351_v52 = vpop.f32.mrb[11].mxu0  ;;  %v1026_v53 = vpack.c.bf16 %v970_v31, %v968_v37  ;;  %v2107_v35 = vpop.permute.xlu1 %671  ;;  %v901_v48 = vld [vmem:[%s2393_s1 + $0x88] sm:$0xff] }
 0x111   :  { %v853_v56 = vadd.f32 %v2012_v40, %v713_v39  ;;  %v715_v34 = vmul.f32 %v2008_v33, %v351_v52  ;;  %v1027_v58 = vpack.c.bf16 %v971_v45, %v969_v44 }
 0x112   :  { %v932_v59 = vadd.f32 %v892_v46, %v852_v49  ;;  %v854_v60 = vadd.f32 %v2014_v41, %v714_v51 }
 0x113   :  { %v933_v63 = vadd.f32 %v893_v50, %v853_v56  ;;  %v855_v0 = vadd.f32 %v2014_v41, %v715_v34  ;;  %1166 = vmatprep.subr.bf16.mxu1 %v1027_v58  ;;  %v903_v58 = vld [vmem:[%s2393_s1 + $0x98] sm:$0xff] }
 0x114   :  { %v934_v40 = vadd.f32 %v894_v57, %v854_v60  ;;  %1167 = vmatpush1.bf16.msra.mxu1 %v1026_v53  ;;  %v972_v4 = vmax.f32 %v932_v59, 0.0  ;;  %v902_v53 = vld [vmem:[%s2393_s1 + $0x90] sm:$0xff] }
 0x115   :  { %v935_v2 = vadd.f32 %v895_v61, %v855_v0  ;;  %v355_v3 = vpop.f32.mrb[12].mxu0  ;;  %v973_v9 = vmax.f32 %v933_v63, 0.0  ;;  %v812_v63 = vpop.permute.xlu1 %811 }
 0x116   :  { %v974_v33 = vmax.f32 %v934_v40, 0.0  ;;  %v716_v5 = vmul.f32 %v2016_v42, %v355_v3  ;;  %v357_v6 = vpop.f32.mrb[13].mxu0 }
 0x117   :  { %v975_v10 = vmax.f32 %v935_v2, 0.0  ;;  %v717_v41 = vmul.f32 %v2016_v42, %v357_v6  ;;  %v359_v12 = vpop.f32.mrb[14].mxu0  ;;  %v904_v6 = vld [vmem:[%s2393_s1 + $0xa0] sm:$0xff] }
 0x118   :  { %v856_v13 = vadd.f32 %v2020_v47, %v716_v5  ;;  %v718_v16 = vmul.f32 %v2018_v43, %v359_v12  ;;  %v361_v17 = vpop.f32.mrb[15].mxu0  ;;  %v1028_v18 = vpack.c.bf16 %v974_v33, %v972_v4 }
 0x119   :  { %v857_v21 = vadd.f32 %v2020_v47, %v717_v41  ;;  %v719_v42 = vmul.f32 %v2018_v43, %v361_v17  ;;  %v1029_v23 = vpack.c.bf16 %v975_v10, %v973_v9  ;;  %v2104_v47 = vpop.permute.xlu0 %666  ;;  %v906_v17 = vld [vmem:[%s2393_s1 + $0xb0] sm:$0xff] }
 0x11a   :  { %v936_v24 = vadd.f32 %v896_v11, %v856_v13  ;;  %v858_v25 = vadd.f32 %v2028_v55, %v718_v16  ;;  %v905_v11 = vld [vmem:[%s2393_s1 + $0xa8] sm:$0xff] }
 0x11b   :  { %v937_v27 = vadd.f32 %v897_v14, %v857_v21  ;;  %v859_v29 = vadd.f32 %v2028_v55, %v719_v42  ;;  %1168 = vmatprep.subr.bf16.mxu1 %v1029_v23  ;;  %v900_v55 = vld [vmem:[%s2393_s1 + $0x80] sm:$0xff]  ;;  %v907_v42 = vld [vmem:[%s2393_s1 + $0xb8] sm:$0xff]  ;;  %v682_v23 = vpop.permute.xlu1 %681 }
 0x11c   :  { %v938_v15 = vadd.f32 %v898_v22, %v858_v25  ;;  %1169 = vmatpush1.bf16.msra.mxu1 %v1028_v18  ;;  %v976_v36 = vmax.f32 %v936_v24, 0.0 }
 0x11d   :  { %v939_v19 = vadd.f32 %v899_v26, %v859_v29  ;;  %v365_v32 = vpop.f32.mrb[16].mxu0  ;;  %v977_v38 = vmax.f32 %v937_v27, 0.0  ;;  %v807_v59 = vpop.permute.xlu0 %806 }
 0x11e   :  { %v978_v43 = vmax.f32 %v938_v15, 0.0  ;;  %v720_v37 = vmul.f32 %v2036_v1, %v365_v32  ;;  %v367_v31 = vpop.f32.mrb[17].mxu0 }
 0x11f   :  { %v979_v44 = vmax.f32 %v939_v19, 0.0  ;;  %v721_v45 = vmul.f32 %v2036_v1, %v367_v31  ;;  %v369_v46 = vpop.f32.mrb[18].mxu0 }
 0x120   :  { %v860_v39 = vadd.f32 %v2052_v28, %v720_v37  ;;  %v722_v49 = vmul.f32 %v2038_v8, %v369_v46  ;;  %v371_v50 = vpop.f32.mrb[19].mxu0  ;;  %v1030_v51 = vpack.c.bf16 %v978_v43, %v976_v36  ;;  %v908_v37 = vld [vmem:[%s2393_s1 + $0xc0] sm:$0xff] }
 0x121   :  { %v861_v52 = vadd.f32 %v2052_v28, %v721_v45  ;;  %v723_v56 = vmul.f32 %v2038_v8, %v371_v50  ;;  %v1031_v1 = vpack.c.bf16 %v979_v44, %v977_v38  ;;  %v677_v14 = vpop.permute.xlu0 %676  ;;  %v909_v44 = vld [vmem:[%s2393_s1 + $0xc8] sm:$0xff] }
 0x122   :  { %v940_v57 = vadd.f32 %v900_v55, %v860_v39  ;;  %v862_v34 = vadd.f32 %v2054_v30, %v722_v49  ;;  %v822_v39 = vpop.permute.xlu1 %821  ;;  %v910_v49 = vld [vmem:[%s2393_s1 + $0xd0] sm:$0xff] }
 0x123   :  { %v941_v60 = vadd.f32 %v901_v48, %v861_v52  ;;  %v863_v61 = vadd.f32 %v2054_v30, %v723_v56  ;;  %1170 = vmatprep.subr.bf16.mxu1 %v1031_v1 }
 0x124   :  { %v942_v28 = vadd.f32 %v902_v53, %v862_v34  ;;  %1171 = vmatpush1.bf16.msra.mxu1 %v1030_v51  ;;  %v980_v2 = vmax.f32 %v940_v57, 0.0  ;;  %v911_v53 = vld [vmem:[%s2393_s1 + $0xd8] sm:$0xff] }
 0x125   :  { %v943_v0 = vadd.f32 %v903_v58, %v863_v61  ;;  %v375_v40 = vpop.f32.mrb[20].mxu0  ;;  %v981_v33 = vmax.f32 %v941_v60, 0.0  ;;  %v817_v32 = vpop.permute.xlu0 %816 }
 0x126   :  { %v982_v8 = vmax.f32 %v942_v28, 0.0  ;;  %v724_v3 = vmul.f32 %v2066_v54, %v375_v40  ;;  %v377_v4 = vpop.f32.mrb[21].mxu0 }
 0x127   :  { %v983_v5 = vmax.f32 %v943_v0, 0.0  ;;  %v725_v9 = vmul.f32 %v2066_v54, %v377_v4  ;;  %v379_v30 = vpop.f32.mrb[22].mxu0 }
 0x128   :  { %v864_v10 = vadd.f32 %v2081_v7, %v724_v3  ;;  %v726_v41 = vmul.f32 %v2077_v62, %v379_v30  ;;  %v381_v12 = vpop.f32.mrb[23].mxu0  ;;  %v1032_v13 = vpack.c.bf16 %v982_v8, %v980_v2  ;;  %v912_v8 = vld [vmem:[%s2393_s1 + $0xe0] sm:$0xff] }
 0x129   :  { %v865_v16 = vadd.f32 %v2081_v7, %v725_v9  ;;  %v727_v54 = vmul.f32 %v2077_v62, %v381_v12  ;;  %v1033_v18 = vpack.c.bf16 %v983_v5, %v981_v33  ;;  %v687_v34 = vpop.permute.xlu0 %686  ;;  %v913_v33 = vld [vmem:[%s2393_s1 + $0xe8] sm:$0xff] }
 0x12a   :  { %v944_v21 = vadd.f32 %v904_v6, %v864_v10  ;;  %v866_v22 = vadd.f32 %v2092_v20, %v726_v41  ;;  %v914_v10 = vld [vmem:[%s2393_s1 + $0xf0] sm:$0xff] }
 0x12b   :  { %v945_v24 = vadd.f32 %v905_v11, %v865_v16  ;;  %v867_v25 = vadd.f32 %v2092_v20, %v727_v54  ;;  %1172 = vmatprep.subr.bf16.mxu1 %v1033_v18 }
 0x12c   :  { %v946_v7 = vadd.f32 %v906_v17, %v866_v22  ;;  %1173 = vmatpush1.bf16.msra.mxu1 %v1032_v13  ;;  %v984_v29 = vmax.f32 %v944_v21, 0.0 }
 0x12d   :  { %v947_v26 = vadd.f32 %v907_v42, %v867_v25  ;;  %v385_v27 = vpop.f32.mrb[24].mxu0  ;;  %v985_v36 = vmax.f32 %v945_v24, 0.0  ;;  %v827_v16 = vpop.permute.xlu0 %826 }
 0x12e   :  { %v986_v15 = vmax.f32 %v946_v7, 0.0  ;;  %v728_v62 = vmul.f32 %v2104_v47, %v385_v27  ;;  %v387_v19 = vpop.f32.mrb[25].mxu0 }
 0x12f   :  { %v987_v43 = vmax.f32 %v947_v26, 0.0  ;;  %v729_v31 = vmul.f32 %v2104_v47, %v387_v19  ;;  %v389_v20 = vpop.f32.mrb[26].mxu0 }
 0x130   :  { %v868_v38 = vadd.f32 %v807_v59, %v728_v62  ;;  %v730_v55 = vmul.f32 %v2107_v35, %v389_v20  ;;  %v391_v45 = vpop.f32.mrb[27].mxu0  ;;  %v1034_v46 = vpack.c.bf16 %v986_v15, %v984_v29  ;;  %v916_v29 = vld [vmem:[%s2393_s1 + $0x100] sm:$0xff] }
 0x131   :  { %v869_v48 = vadd.f32 %v807_v59, %v729_v31  ;;  %v731_v50 = vmul.f32 %v2107_v35, %v391_v45  ;;  %v1035_v51 = vpack.c.bf16 %v987_v43, %v985_v36  ;;  %v692_v35 = vpop.permute.xlu1 %691  ;;  %v697_v31 = vpop.permute.xlu0 %696 }
 0x132   :  { %v948_v47 = vadd.f32 %v908_v37, %v868_v38  ;;  %v870_v52 = vadd.f32 %v812_v63, %v730_v55  ;;  %v918_v38 = vld [vmem:[%s2393_s1 + $0x110] sm:$0xff] }
 0x133   :  { %v949_v56 = vadd.f32 %v909_v44, %v869_v48  ;;  %v871_v1 = vadd.f32 %v812_v63, %v731_v50  ;;  %1174 = vmatprep.subr.bf16.mxu1 %v1035_v51 }
 0x134   :  { %v950_v57 = vadd.f32 %v910_v49, %v870_v52  ;;  %1175 = vmatpush1.bf16.msra.mxu1 %v1034_v46  ;;  %v988_v60 = vmax.f32 %v948_v47, 0.0 }
 0x135   :  { %v951_v58 = vadd.f32 %v911_v53, %v871_v1  ;;  %v395_v59 = vpop.f32.mrb[28].mxu0  ;;  %v989_v40 = vmax.f32 %v949_v56, 0.0  ;;  %v832_v21 = vpop.permute.xlu1 %831 }
 0x136   :  { %v990_v61 = vmax.f32 %v950_v57, 0.0  ;;  %v732_v28 = vmul.f32 %v677_v14, %v395_v59  ;;  %v397_v0 = vpop.f32.mrb[29].mxu0 }
 0x137   :  { %v991_v2 = vmax.f32 %v951_v58, 0.0  ;;  %v733_v3 = vmul.f32 %v677_v14, %v397_v0  ;;  %v399_v4 = vpop.f32.mrb[30].mxu0  ;;  %v915_v14 = vld [vmem:[%s2393_s1 + $0xf8] sm:$0xff] }
 0x138   :  { %v872_v63 = vadd.f32 %v817_v32, %v732_v28  ;;  %v734_v5 = vmul.f32 %v682_v23, %v399_v4  ;;  %v401_v6 = vpop.f32.mrb[31].mxu0  ;;  %v1036_v9 = vpack.c.bf16 %v990_v61, %v988_v60  ;;  %v920_v60 = vld [vmem:[%s2393_s1 + $0x120] sm:$0xff] }
 0x139   :  { %v873_v30 = vadd.f32 %v817_v32, %v733_v3  ;;  %v735_v11 = vmul.f32 %v682_v23, %v401_v6  ;;  %v1037_v41 = vpack.c.bf16 %v991_v2, %v989_v40  ;;  %v917_v32 = vld [vmem:[%s2393_s1 + $0x108] sm:$0xff]  ;;  %v702_v48 = vpop.permute.xlu1 %701 }
 0x13a   :  { %v952_v12 = vadd.f32 %v912_v8, %v872_v63  ;;  %v874_v13 = vadd.f32 %v822_v39, %v734_v5  ;;  %v922_v63 = vld [vmem:[%s2393_s1 + $0x130] sm:$0xff] }
 0x13b   :  { %v953_v17 = vadd.f32 %v913_v33, %v873_v30  ;;  %v875_v54 = vadd.f32 %v822_v39, %v735_v11  ;;  %1176 = vmatprep.subr.bf16.mxu1 %v1037_v41  ;;  %v919_v39 = vld [vmem:[%s2393_s1 + $0x118] sm:$0xff] }
 0x13c   :  { %v954_v18 = vadd.f32 %v914_v10, %v874_v13  ;;  %1177 = vmatpush1.bf16.msra.mxu1 %v1036_v9  ;;  %v992_v24 = vmax.f32 %v952_v12, 0.0  ;;  %v923_v30 = vld [vmem:[%s2393_s1 + $0x138] sm:$0xff] }
 0x13d   :  { %v955_v22 = vadd.f32 %v915_v14, %v875_v54  ;;  %v405_v42 = vpop.f32.mrb[32].mxu0  ;;  %v993_v26 = vmax.f32 %v953_v17, 0.0  ;;  %v842_v3 = vpop.permute.xlu1 %841 }
 0x13e   :  { %v994_v25 = vmax.f32 %v954_v18, 0.0  ;;  %v736_v7 = vmul.f32 %v687_v34, %v405_v42  ;;  %v407_v23 = vpop.f32.mrb[33].mxu0  ;;  %v1489_v42 = vld [vmem:[%s2392_s3 + $0x10] ss:$8 sps:$4 sm:$0xff]  }
 0x13f   :  { %v995_v27 = vmax.f32 %v955_v22, 0.0  ;;  %v737_v15 = vmul.f32 %v687_v34, %v407_v23  ;;  %v409_v62 = vpop.f32.mrb[34].mxu0  ;;  %v837_v34 = vpop.permute.xlu0 %836  ;;  %v1487_v22 = vld [vmem:[%s2392_s3 + $0x14] ss:$8 sps:$4 sm:$0xff]   ;;  %v1495_v23 = vld [vmem:[%s2392_s3 + $0x30] ss:$8 sps:$4 sm:$0xff]  }
 0x140   :  { %v876_v19 = vadd.f32 %v827_v16, %v736_v7  ;;  %v738_v36 = vmul.f32 %v692_v35, %v409_v62  ;;  %v411_v43 = vpop.f32.mrb[35].mxu0  ;;  %v1038_v37 = vpack.c.bf16 %v994_v25, %v992_v24  ;;  %v1490_v24 = vld [vmem:[%s2392_s3 + $0x24] ss:$8 sps:$4 sm:$0xff]   ;;  %v1492_v25 = vld [vmem:[%s2392_s3 + $0x20] ss:$8 sps:$4 sm:$0xff]  }
 0x141   :  { %v877_v20 = vadd.f32 %v827_v16, %v737_v15  ;;  %v739_v44 = vmul.f32 %v692_v35, %v411_v43  ;;  %v1039_v55 = vpack.c.bf16 %v995_v27, %v993_v26  ;;  %v921_v35 = vld [vmem:[%s2393_s1 + $0x128] sm:$0xff]  ;;  %v1493_v7 = vld [vmem:[%s2392_s3 + $0x34] ss:$8 sps:$4 sm:$0xff]   ;;  %v1501_v15 = vld [vmem:[%s2392_s3 + $0x50] ss:$8 sps:$4 sm:$0xff]  }
 0x142   :  { %v956_v45 = vadd.f32 %v916_v29, %v876_v19  ;;  %v878_v46 = vadd.f32 %v832_v21, %v738_v36  ;;  %v1496_v26 = vld [vmem:[%s2392_s3 + $0x44] ss:$8 sps:$4 sm:$0xff]   ;;  %v1498_v27 = vld [vmem:[%s2392_s3 + $0x40] ss:$8 sps:$4 sm:$0xff]   ;;  %v1499_v29 = vld [vmem:[%s2392_s3 + $0x54] ss:$8 sps:$4 sm:$0xff]  }
 0x143   :  { %v957_v49 = vadd.f32 %v917_v32, %v877_v20  ;;  %v879_v50 = vadd.f32 %v832_v21, %v739_v44  ;;  %1178 = vmatprep.subr.bf16.mxu1 %v1039_v55  ;;  %v1484_v21 = vld [vmem:[%s2392_s3] ss:$8 sps:$4 sm:$0xff]   ;;  %v1502_v62 = vld [vmem:[%s2392_s3 + $0x64] ss:$8 sps:$4 sm:$0xff]   ;;  %v1505_v32 = vld [vmem:[%s2392_s3 + $0x74] ss:$8 sps:$4 sm:$0xff]  }
 0x144   :  { %v958_v51 = vadd.f32 %v918_v38, %v878_v46  ;;  %1179 = vmatpush1.bf16.msra.mxu1 %v1038_v37  ;;  %v996_v53 = vmax.f32 %v956_v45, 0.0  ;;  %v1504_v19 = vld [vmem:[%s2392_s3 + $0x60] ss:$8 sps:$4 sm:$0xff]   ;;  %v1507_v36 = vld [vmem:[%s2392_s3 + $0x70] ss:$8 sps:$4 sm:$0xff]  }
 0x145   :  { %v959_v47 = vadd.f32 %v919_v39, %v879_v50  ;;  %v415_v52 = vpop.f32.mrb[36].mxu0  ;;  %v997_v58 = vmax.f32 %v957_v49, 0.0  ;;  %v1508_v43 = vld [vmem:[%s2392_s3 + $0x84] ss:$8 sps:$4 sm:$0xff]   ;;  %v1510_v37 = vld [vmem:[%s2392_s3 + $0x80] ss:$8 sps:$4 sm:$0xff]  }
 0x146   :  { %v998_v56 = vmax.f32 %v958_v51, 0.0  ;;  %v740_v1 = vmul.f32 %v697_v31, %v415_v52  ;;  %v417_v57 = vpop.f32.mrb[37].mxu0  ;;  %v1513_v20 = vld [vmem:[%s2392_s3 + $0x90] ss:$8 sps:$4 sm:$0xff]  }
 0x147   :  { %v999_v59 = vmax.f32 %v959_v47, 0.0  ;;  %v741_v61 = vmul.f32 %v697_v31, %v417_v57  ;;  %v419_v28 = vpop.f32.mrb[38].mxu0  ;;  %v1511_v31 = vld [vmem:[%s2392_s3 + $0x94] ss:$8 sps:$4 sm:$0xff]  }
 0x148   :  { %v880_v0 = vadd.f32 %v837_v34, %v740_v1  ;;  %v742_v40 = vmul.f32 %v702_v48, %v419_v28  ;;  %v421_v2 = vpop.f32.mrb[39].mxu0  ;;  %v1040_v8 = vpack.c.bf16 %v998_v56, %v996_v53 }
 0x149   :  { %v881_v4 = vadd.f32 %v837_v34, %v741_v61  ;;  %v743_v33 = vmul.f32 %v702_v48, %v421_v2  ;;  %v1041_v5 = vpack.c.bf16 %v999_v59, %v997_v58 }
 0x14a   :  { %v960_v6 = vadd.f32 %v920_v60, %v880_v0  ;;  %v882_v9 = vadd.f32 %v842_v3, %v742_v40 }
 0x14b   :  { %v961_v10 = vadd.f32 %v921_v35, %v881_v4  ;;  %v883_v11 = vadd.f32 %v842_v3, %v743_v33  ;;  %1180 = vmatprep.subr.bf16.mxu1 %v1041_v5 }
 0x14c   :  { %v962_v41 = vadd.f32 %v922_v63, %v882_v9  ;;  %1181 = vmatpush1.bf16.msra.mxu1 %v1040_v8  ;;  %v1000_v13 = vmax.f32 %v960_v6, 0.0 }
 0x14d   :  { %v963_v12 = vadd.f32 %v923_v30, %v883_v11  ;;  %v1001_v16 = vmax.f32 %v961_v10, 0.0 }
 0x14e   :  { %v1002_v14 = vmax.f32 %v962_v41, 0.0 }
 0x14f   :  { %v1003_v17 = vmax.f32 %v963_v12, 0.0 }
 0x150   :  { %v1042_v54 = vpack.c.bf16 %v1002_v14, %v1000_v13 }
 0x151   :  { %v1043_v18 = vpack.c.bf16 %v1003_v17, %v1001_v16 }
 0x153   :  { %1182 = vmatprep.subr.bf16.mxu1 %v1043_v18 }
 0x154   :  { %1183 = vmatpush1.bf16.msra.mxu1 %v1042_v54 }
 0x157   :  { %1197 = vmatmul.mubr.bf16.vlgmr.msra.gmra.mrb[0].mxu1 %v1484_v21 }
 0x158   :  { %1412 = vmatprep.mubr.msk.bf16.mxu1 %vm260_vm0, %v1487_v22 }
 0x15f   :  { %1207 = vmatmul.mubr.bf16.gmra.mrb[4].mxu1 %v1489_v42 }
 0x160   :  { %1413 = vmatprep.mubr.msk.bf16.mxu1 %vm260_vm0, %v1490_v24 }
 0x167   :  { %1217 = vmatmul.mubr.bf16.gmra.mrb[8].mxu1 %v1492_v25 }
 0x168   :  { %1414 = vmatprep.mubr.msk.bf16.mxu1 %vm260_vm0, %v1493_v7 }
 0x16f   :  { %1227 = vmatmul.mubr.bf16.gmra.mrb[12].mxu1 %v1495_v23 }
 0x170   :  { %1415 = vmatprep.mubr.msk.bf16.mxu1 %vm260_vm0, %v1496_v26 }
 0x177   :  { %1237 = vmatmul.mubr.bf16.gmra.mrb[16].mxu1 %v1498_v27 }
 0x178   :  { %1416 = vmatprep.mubr.msk.bf16.mxu1 %vm260_vm0, %v1499_v29 }
 0x17f   :  { %1247 = vmatmul.mubr.bf16.gmra.mrb[20].mxu1 %v1501_v15 }
 0x180   :  { %1417 = vmatprep.mubr.msk.bf16.mxu1 %vm260_vm0, %v1502_v62 }
 0x187   :  { %1257 = vmatmul.mubr.bf16.gmra.mrb[24].mxu1 %v1504_v19 }
 0x188   :  { %1418 = vmatprep.mubr.msk.bf16.mxu1 %vm260_vm0, %v1505_v32 }
 0x18f   :  { %1267 = vmatmul.mubr.bf16.gmra.mrb[28].mxu1 %v1507_v36 }
 0x190   :  { %1419 = vmatprep.mubr.msk.bf16.mxu1 %vm260_vm0, %v1508_v43 }
 0x197   :  { %1277 = vmatmul.mubr.bf16.gmra.mrb[32].mxu1 %v1510_v37 }
 0x198   :  { %1420 = vmatprep.mubr.msk.bf16.mxu1 %vm260_vm0, %v1511_v31 }
 0x19f   :  { %1287 = vmatmul.mubr.bf16.gmra.mrb[36].mxu1 %v1513_v20 }
 0x22a   :  { %v1198_v38 = vpop.f32.mrb[0].mxu1 }
 0x22b   :  { %1297 = vst [vmem:[%s2394_s8] sm:$0xff] %v1198_v38  ;;  %v1200_v44 = vpop.f32.mrb[1].mxu1 }
 0x22c   :  { %1298 = vst [vmem:[%s2394_s8 + $0x8] sm:$0xff] %v1200_v44  ;;  %v1202_v55 = vpop.f32.mrb[2].mxu1 }
 0x22d   :  { %1299 = vst [vmem:[%s2394_s8 + $0x10] sm:$0xff] %v1202_v55  ;;  %v1204_v45 = vpop.f32.mrb[3].mxu1 }
 0x22e   :  { %1300 = vst [vmem:[%s2394_s8 + $0x18] sm:$0xff] %v1204_v45 }
 0x232   :  { %v1208_v46 = vpop.f32.mrb[4].mxu1 }
 0x233   :  { %1301 = vst [vmem:[%s2394_s8 + $0x20] sm:$0xff] %v1208_v46  ;;  %v1210_v39 = vpop.f32.mrb[5].mxu1 }
 0x234   :  { %1302 = vst [vmem:[%s2394_s8 + $0x28] sm:$0xff] %v1210_v39  ;;  %v1212_v48 = vpop.f32.mrb[6].mxu1 }
 0x235   :  { %1303 = vst [vmem:[%s2394_s8 + $0x30] sm:$0xff] %v1212_v48  ;;  %v1214_v49 = vpop.f32.mrb[7].mxu1 }
 0x236   :  { %1304 = vst [vmem:[%s2394_s8 + $0x38] sm:$0xff] %v1214_v49 }
 0x23a   :  { %v1218_v50 = vpop.f32.mrb[8].mxu1 }
 0x23b   :  { %1305 = vst [vmem:[%s2394_s8 + $0x40] sm:$0xff] %v1218_v50  ;;  %v1220_v51 = vpop.f32.mrb[9].mxu1 }
 0x23c   :  { %1306 = vst [vmem:[%s2394_s8 + $0x48] sm:$0xff] %v1220_v51  ;;  %v1222_v47 = vpop.f32.mrb[10].mxu1 }
 0x23d   :  { %1307 = vst [vmem:[%s2394_s8 + $0x50] sm:$0xff] %v1222_v47  ;;  %v1224_v52 = vpop.f32.mrb[11].mxu1 }
 0x23e   :  { %1308 = vst [vmem:[%s2394_s8 + $0x58] sm:$0xff] %v1224_v52 }
 0x242   :  { %v1228_v53 = vpop.f32.mrb[12].mxu1 }
 0x243   :  { %1309 = vst [vmem:[%s2394_s8 + $0x60] sm:$0xff] %v1228_v53  ;;  %v1230_v56 = vpop.f32.mrb[13].mxu1 }
 0x244   :  { %1310 = vst [vmem:[%s2394_s8 + $0x68] sm:$0xff] %v1230_v56  ;;  %v1232_v1 = vpop.f32.mrb[14].mxu1 }
 0x245   :  { %1311 = vst [vmem:[%s2394_s8 + $0x70] sm:$0xff] %v1232_v1  ;;  %v1234_v57 = vpop.f32.mrb[15].mxu1 }
 0x246   :  { %1312 = vst [vmem:[%s2394_s8 + $0x78] sm:$0xff] %v1234_v57 }
 0x24a   :  { %v1238_v34 = vpop.f32.mrb[16].mxu1 }
 0x24b   :  { %1313 = vst [vmem:[%s2394_s8 + $0x80] sm:$0xff] %v1238_v34  ;;  %v1240_v58 = vpop.f32.mrb[17].mxu1 }
 0x24c   :  { %1314 = vst [vmem:[%s2394_s8 + $0x88] sm:$0xff] %v1240_v58  ;;  %v1242_v59 = vpop.f32.mrb[18].mxu1 }
 0x24d   :  { %1315 = vst [vmem:[%s2394_s8 + $0x90] sm:$0xff] %v1242_v59  ;;  %v1244_v60 = vpop.f32.mrb[19].mxu1 }
 0x24e   :  { %1316 = vst [vmem:[%s2394_s8 + $0x98] sm:$0xff] %v1244_v60 }
 0x252   :  { %v1248_v61 = vpop.f32.mrb[20].mxu1 }
 0x253   :  { %1317 = vst [vmem:[%s2394_s8 + $0xa0] sm:$0xff] %v1248_v61  ;;  %v1250_v28 = vpop.f32.mrb[21].mxu1 }
 0x254   :  { %1318 = vst [vmem:[%s2394_s8 + $0xa8] sm:$0xff] %v1250_v28  ;;  %v1252_v0 = vpop.f32.mrb[22].mxu1 }
 0x255   :  { %1319 = vst [vmem:[%s2394_s8 + $0xb0] sm:$0xff] %v1252_v0  ;;  %v1254_v35 = vpop.f32.mrb[23].mxu1 }
 0x256   :  { %1320 = vst [vmem:[%s2394_s8 + $0xb8] sm:$0xff] %v1254_v35 }
 0x25a   :  { %v1258_v40 = vpop.f32.mrb[24].mxu1 }
 0x25b   :  { %1321 = vst [vmem:[%s2394_s8 + $0xc0] sm:$0xff] %v1258_v40  ;;  %v1260_v2 = vpop.f32.mrb[25].mxu1 }
 0x25c   :  { %1322 = vst [vmem:[%s2394_s8 + $0xc8] sm:$0xff] %v1260_v2  ;;  %v1262_v8 = vpop.f32.mrb[26].mxu1 }
 0x25d   :  { %1323 = vst [vmem:[%s2394_s8 + $0xd0] sm:$0xff] %v1262_v8  ;;  %v1264_v3 = vpop.f32.mrb[27].mxu1 }
 0x25e   :  { %1324 = vst [vmem:[%s2394_s8 + $0xd8] sm:$0xff] %v1264_v3 }
 0x262   :  { %v1268_v4 = vpop.f32.mrb[28].mxu1 }
 0x263   :  { %1325 = vst [vmem:[%s2394_s8 + $0xe0] sm:$0xff] %v1268_v4  ;;  %v1270_v63 = vpop.f32.mrb[29].mxu1 }
 0x264   :  { %1326 = vst [vmem:[%s2394_s8 + $0xe8] sm:$0xff] %v1270_v63  ;;  %v1272_v33 = vpop.f32.mrb[30].mxu1 }
 0x265   :  { %1327 = vst [vmem:[%s2394_s8 + $0xf0] sm:$0xff] %v1272_v33  ;;  %v1274_v5 = vpop.f32.mrb[31].mxu1 }
 0x266   :  { %1328 = vst [vmem:[%s2394_s8 + $0xf8] sm:$0xff] %v1274_v5 }
 0x26a   :  { %v1278_v6 = vpop.f32.mrb[32].mxu1 }
 0x26b   :  { %1329 = vst [vmem:[%s2394_s8 + $0x100] sm:$0xff] %v1278_v6  ;;  %v1280_v9 = vpop.f32.mrb[33].mxu1 }
 0x26c   :  { %1330 = vst [vmem:[%s2394_s8 + $0x108] sm:$0xff] %v1280_v9  ;;  %v1282_v30 = vpop.f32.mrb[34].mxu1 }
 0x26d   :  { %1331 = vst [vmem:[%s2394_s8 + $0x110] sm:$0xff] %v1282_v30  ;;  %v1284_v10 = vpop.f32.mrb[35].mxu1 }
 0x26e   :  { %1332 = vst [vmem:[%s2394_s8 + $0x118] sm:$0xff] %v1284_v10 }
 0x272   :  { %v1288_v11 = vpop.f32.mrb[36].mxu1 }
 0x273   :  { %1333 = vst [vmem:[%s2394_s8 + $0x120] sm:$0xff] %v1288_v11  ;;  %v1290_v41 = vpop.f32.mrb[37].mxu1 }
 0x274   :  { %1334 = vst [vmem:[%s2394_s8 + $0x128] sm:$0xff] %v1290_v41  ;;  %v1292_v12 = vpop.f32.mrb[38].mxu1 }
 0x275   :  { %1335 = vst [vmem:[%s2394_s8 + $0x130] sm:$0xff] %v1292_v12  ;;  %v1294_v13 = vpop.f32.mrb[39].mxu1 }
 0x276   :  { %1336 = vst [vmem:[%s2394_s8 + $0x138] sm:$0xff] %v1294_v13 }

</bundles_post_ra>
